<compile_context>
chip_gen: v6e
topology: v6e:2x2x1
jax: 0.10.0
libtpu: 0.0.40
codegen_flags: <defaults>
</compile_context>

<pallas_src>
import jax
import jax.numpy as jnp
from jax import lax
from jax.experimental import pallas as pl
from jax.experimental.pallas import tpu as pltpu

_BATCH_TILE = 8  # sentences per grid step == f32 sublane count


def _lstm_tagger_kernel(tok_ref, emb_ref, wih_ref, b_ref, whh_ref,
                        wout_ref, bout_ref, out_ref, gx_scr, h_scr):
    """One 8-sentence block per invocation; rows are t-major: row = t*8 + b."""
    TB = out_ref.shape[0]                    # T * _BATCH_TILE
    T = TB // _BATCH_TILE
    H = whh_ref.shape[0]
    V = emb_ref.shape[0]

    w_hh = whh_ref[...]                      # (H, 4H), resident across recurrence

    # --- fused embedding + input-side gate projection --------------------------
    # table[v] = emb[v] @ W_ih^T + (b_ih + b_hh)   (weight-only, one tiny matmul)
    table = jnp.dot(emb_ref[...], wih_ref[...],
                    preferred_element_type=jnp.float32) + b_ref[...]   # (V, 4H)
    # Embedding "gather" as a one-hot MXU matmul: (TB, V) @ (V, 4H).
    tok = tok_ref[...]                                                 # (TB, 1) i32
    iota = lax.broadcasted_iota(jnp.int32, (TB, V), 1)
    onehot = (iota == tok).astype(jnp.float32)
    gx_scr[...] = jnp.dot(onehot, table, preferred_element_type=jnp.float32)

    # --- sequential LSTM recurrence (torch gate order i, f, g, o) --------------
    def step(t, carry):
        h, c = carry
        row = pl.multiple_of(t * _BATCH_TILE, _BATCH_TILE)
        gates = gx_scr[pl.ds(row, _BATCH_TILE), :] + jnp.dot(
            h, w_hh, preferred_element_type=jnp.float32)               # (8, 4H)
        # Two full-vreg EUP pushes instead of four 32-lane ones; the per-gate
        # extraction below is a static lane slice (XLU rotate, off the VALU/EUP).
        sig = jax.nn.sigmoid(gates)
        th = jnp.tanh(gates)
        i_g = sig[:, 0 * H:1 * H]
        f_g = sig[:, 1 * H:2 * H]
        g_g = th[:, 2 * H:3 * H]
        o_g = sig[:, 3 * H:4 * H]
        c = f_g * c + i_g * g_g
        h = o_g * jnp.tanh(c)
        h_scr[pl.ds(row, _BATCH_TILE), :] = h        # row store; no concatenate
        return h, c

    h0 = jnp.zeros((_BATCH_TILE, H), jnp.float32)
    c0 = jnp.zeros((_BATCH_TILE, H), jnp.float32)
    lax.fori_loop(0, T, step, (h0, c0), unroll=True)

    # --- hidden2tag + log_softmax, one lane-dense (TB, 128) store --------------
    tag = jnp.dot(h_scr[...], wout_ref[...],
                  preferred_element_type=jnp.float32) + bout_ref[...]
    m = jnp.max(tag, axis=-1, keepdims=True)
    z = tag - m
    lse = jnp.log(jnp.sum(jnp.exp(z), axis=-1, keepdims=True))
    out_ref[...] = z - lse


@jax.jit
def lstm_tagger_forward_batched(tokens, embedding, w_ih, w_hh, b_ih, b_hh,
                                w_out, b_out):
    """tokens: (B, T) int32 -> (B, T, V) log-probabilities (zero initial state)."""
    B, T = tokens.shape
    V, E = embedding.shape
    H = w_hh.shape[1]
    GH = 4 * H
    VP = pl.cdiv(V, 128) * 128               # lane-dense padded vocab width
    NB = pl.cdiv(B, _BATCH_TILE)             # 8-sentence blocks (grid extent)
    BP = NB * _BATCH_TILE
    TB = T * _BATCH_TILE

    tokens = jnp.clip(tokens.astype(jnp.int32), 0, V - 1)   # defensive clamp
    # Pad batch to a sublane multiple and lay rows out t-major within each
    # 8-sentence block: flat row = g*T*8 + t*8 + b_local.
    tok_p = jnp.zeros((BP, T), jnp.int32).at[:B].set(tokens)
    tok_flat = (tok_p.reshape(NB, _BATCH_TILE, T)
                .transpose(0, 2, 1)
                .reshape(NB * TB, 1))

    # Matmul-friendly fused-gate layouts (gates i,f,g,o stacked along lanes).
    wih_all = w_ih.T.astype(jnp.float32)                     # (E, 4H)
    whh_all = w_hh.T.astype(jnp.float32)                     # (H, 4H)
    b_all = (b_ih + b_hh).reshape(1, GH).astype(jnp.float32)
    # Padded vocab columns: zero weights, -1e30 bias (finite -> no NaN risk),
    # so log_softmax over the padded axis equals log_softmax over the real V.
    wout_p = jnp.zeros((H, VP), jnp.float32).at[:, :V].set(w_out.T)
    bout_p = jnp.full((1, VP), -1e30, jnp.float32).at[0, :V].set(b_out)

    grid_spec = pltpu.PrefetchScalarGridSpec(
        num_scalar_prefetch=0,
        grid=(NB,),                           # one 8-sentence block per step
        in_specs=[
            pl.BlockSpec((TB, 1), lambda g: (g, 0)),      # tokens (t-major)
            pl.BlockSpec((V, E), lambda g: (0, 0)),       # embedding table
            pl.BlockSpec((E, GH), lambda g: (0, 0)),      # W_ih (fused gates)
            pl.BlockSpec((1, GH), lambda g: (0, 0)),      # fused bias
            pl.BlockSpec((H, GH), lambda g: (0, 0)),      # W_hh (fused gates)
            pl.BlockSpec((H, VP), lambda g: (0, 0)),      # W_out (padded)
            pl.BlockSpec((1, VP), lambda g: (0, 0)),      # b_out (padded)
        ],
        out_specs=pl.BlockSpec((TB, VP), lambda g: (g, 0)),
        scratch_shapes=[
            pltpu.VMEM((TB, GH), jnp.float32),            # per-step gate inputs
            pltpu.VMEM((TB, H), jnp.float32),             # per-step hidden states
        ],
    )

    out_flat = pl.pallas_call(
        _lstm_tagger_kernel,
        out_shape=jax.ShapeDtypeStruct((NB * TB, VP), jnp.float32),
        grid_spec=grid_spec,
        compiler_params=pltpu.CompilerParams(
            # Sentence blocks are independent -> parallel (uses v7x's 2nd TC).
            dimension_semantics=("parallel",),
        ),
    )(tok_flat, embedding.astype(jnp.float32), wih_all, b_all, whh_all,
      wout_p, bout_p)

    out = (out_flat.reshape(NB, T, _BATCH_TILE, VP)
           .transpose(0, 2, 1, 3)
           .reshape(BP, T, VP))
    return out[:B, :, :V]


def lstm_tagger_forward(tokens, embedding, w_ih, w_hh, b_ih, b_hh, w_out, b_out):
    """Single sentence (T,) -> (T, V), matching the torch module's forward
    (hidden state initialized to zeros as in init_hidden)."""
    return lstm_tagger_forward_batched(
        tokens[None, :], embedding, w_ih, w_hh, b_ih, b_hh, w_out, b_out)[0]


def _reference_forward(tokens, embedding, w_ih, w_hh, b_ih, b_hh, w_out, b_out):
    """Pure-JAX reference mirroring torch.nn.LSTM semantics (gate order i,f,g,o)."""
    H = w_hh.shape[1]
    embeds = embedding[tokens]
    h = jnp.zeros((H,), jnp.float32)
    c = jnp.zeros((H,), jnp.float32)
    outs = []
    for t in range(tokens.shape[0]):
        gates = w_ih @ embeds[t] + w_hh @ h + b_ih + b_hh
        i = jax.nn.sigmoid(gates[0 * H:1 * H])
        f = jax.nn.sigmoid(gates[1 * H:2 * H])
        g = jnp.tanh(gates[2 * H:3 * H])
        o = jax.nn.sigmoid(gates[3 * H:4 * H])
        c = f * c + i * g
        h = o * jnp.tanh(c)
        tag = w_out @ h + b_out
        outs.append(jax.nn.log_softmax(tag))
    return jnp.stack(outs)


if __name__ == "__main__":
    # Small shapes implied by the module: embedding_dim=32, hidden_dim=32,
    # vocab_size=16, sentence length = 8 (batch = 1 in the original module).
    EMBEDDING_DIM = 32
    HIDDEN_DIM = 32
    VOCAB_SIZE = 16
    SEQ_LEN = 8
    BATCH = 10   # batched demo: exercises two 8-sentence grid blocks

    key = jax.random.PRNGKey(0)
    keys = jax.random.split(key, 9)

    scale = 0.1
    embedding = scale * jax.random.normal(keys[0], (VOCAB_SIZE, EMBEDDING_DIM), jnp.float32)
    w_ih = scale * jax.random.normal(keys[1], (4 * HIDDEN_DIM, EMBEDDING_DIM), jnp.float32)
    w_hh = scale * jax.random.normal(keys[2], (4 * HIDDEN_DIM, HIDDEN_DIM), jnp.float32)
    b_ih = scale * jax.random.normal(keys[3], (4 * HIDDEN_DIM,), jnp.float32)
    b_hh = scale * jax.random.normal(keys[4], (4 * HIDDEN_DIM,), jnp.float32)
    w_out = scale * jax.random.normal(keys[5], (VOCAB_SIZE, HIDDEN_DIM), jnp.float32)
    b_out = scale * jax.random.normal(keys[6], (VOCAB_SIZE,), jnp.float32)

    tokens = jax.random.randint(keys[7], (SEQ_LEN,), 0, VOCAB_SIZE, jnp.int32)
    tokens_b = jax.random.randint(keys[8], (BATCH, SEQ_LEN), 0, VOCAB_SIZE, jnp.int32)

    # Single sentence — matches the torch module's forward semantics.
    out = lstm_tagger_forward(tokens, embedding, w_ih, w_hh, b_ih, b_hh, w_out, b_out)
    out = jax.block_until_ready(out)
    ref = _reference_forward(tokens, embedding, w_ih, w_hh, b_ih, b_hh, w_out, b_out)
    assert out.shape == (SEQ_LEN, VOCAB_SIZE)
    assert jnp.allclose(out, ref, atol=1e-4, rtol=1e-4), "single-sentence mismatch"

    # Batched path — the structural throughput fix from the perf review.
    out_b = lstm_tagger_forward_batched(tokens_b, embedding, w_ih, w_hh,
                                        b_ih, b_hh, w_out, b_out)
    out_b = jax.block_until_ready(out_b)
    ref_b = jnp.stack([
        _reference_forward(tokens_b[i], embedding, w_ih, w_hh, b_ih, b_hh,
                           w_out, b_out)
        for i in range(BATCH)
    ])
    assert out_b.shape == (BATCH, SEQ_LEN, VOCAB_SIZE)
    assert jnp.allclose(out_b, ref_b, atol=1e-4, rtol=1e-4), "batched mismatch"

    print("KERNEL_OK")
</pallas_src>

<mosaic_0001>
module attributes {stable_mosaic.version = 11 : i64} {
  func.func @_lstm_tagger_kernel(%arg0: i32, %arg1: memref<64x1xi32, #tpu.memory_space<vmem>>, %arg2: memref<16x32xf32, #tpu.memory_space<vmem>>, %arg3: memref<32x128xf32, #tpu.memory_space<vmem>>, %arg4: memref<1x128xf32, #tpu.memory_space<vmem>>, %arg5: memref<32x128xf32, #tpu.memory_space<vmem>>, %arg6: memref<32x128xf32, #tpu.memory_space<vmem>>, %arg7: memref<1x128xf32, #tpu.memory_space<vmem>>, %arg8: memref<64x128xf32, #tpu.memory_space<vmem>>, %arg9: memref<64x128xf32, #tpu.memory_space<vmem>>, %arg10: memref<64x32xf32, #tpu.memory_space<vmem>>) attributes {dimension_semantics = [#tpu.dimension_semantics<parallel>], iteration_bounds = array<i64: 1>, scalar_prefetch = 0 : i64, scratch_operands = 2 : i64, tpu.core_type = #tpu.core_type<tc>, window_params = [{transform_indices = @transform_0, window_bounds = array<i64: 64, 1>}, {pipeline_mode = #tpu.pipeline_mode<synchronous>, transform_indices = @transform_1, window_bounds = array<i64: 16, 32>}, {pipeline_mode = #tpu.pipeline_mode<synchronous>, transform_indices = @transform_2, window_bounds = array<i64: 32, 128>}, {pipeline_mode = #tpu.pipeline_mode<synchronous>, transform_indices = @transform_3, window_bounds = array<i64: 1, 128>}, {pipeline_mode = #tpu.pipeline_mode<synchronous>, transform_indices = @transform_4, window_bounds = array<i64: 32, 128>}, {pipeline_mode = #tpu.pipeline_mode<synchronous>, transform_indices = @transform_5, window_bounds = array<i64: 32, 128>}, {pipeline_mode = #tpu.pipeline_mode<synchronous>, transform_indices = @transform_6, window_bounds = array<i64: 1, 128>}, {transform_indices = @transform_7, window_bounds = array<i64: 64, 128>}]} {
    %c0 = arith.constant 0 : index
    %c0_0 = arith.constant 0 : index
    %0 = vector.load %arg5[%c0, %c0_0] : memref<32x128xf32, #tpu.memory_space<vmem>>, vector<32x128xf32>
    %c0_1 = arith.constant 0 : index
    %c0_2 = arith.constant 0 : index
    %1 = vector.load %arg2[%c0_1, %c0_2] : memref<16x32xf32, #tpu.memory_space<vmem>>, vector<16x32xf32>
    %c0_3 = arith.constant 0 : index
    %c0_4 = arith.constant 0 : index
    %2 = vector.load %arg3[%c0_3, %c0_4] : memref<32x128xf32, #tpu.memory_space<vmem>>, vector<32x128xf32>
    %cst = arith.constant dense<0.000000e+00> : vector<16x128xf32>
    %3 = tpu.matmul %1, %2, %cst {dimension_numbers = #tpu.dot_dimension_numbers<[1], [0], [0], [1], [0, 0, 1, 1], [], []>} : vector<16x32xf32>, vector<32x128xf32>, vector<16x128xf32> -> vector<16x128xf32>
    %c0_5 = arith.constant 0 : index
    %c0_6 = arith.constant 0 : index
    %4 = vector.load %arg4[%c0_5, %c0_6] : memref<1x128xf32, #tpu.memory_space<vmem>>, vector<1x128xf32>
    %5 = vector.broadcast %4 : vector<1x128xf32> to vector<16x128xf32>
    %6 = arith.addf %3, %5 : vector<16x128xf32>
    %c0_7 = arith.constant 0 : index
    %c0_8 = arith.constant 0 : index
    %7 = vector.load %arg1[%c0_7, %c0_8] : memref<64x1xi32, #tpu.memory_space<vmem>>, vector<64x1xi32>
    %8 = tpu.iota {dimensions = array<i32: 1>} : vector<64x16xi32>
    %9 = vector.broadcast %7 : vector<64x1xi32> to vector<64x16xi32>
    %10 = arith.cmpi eq, %8, %9 : vector<64x16xi32>
    %11 = arith.extui %10 : vector<64x16xi1> to vector<64x16xi32>
    %12 = arith.sitofp %11 : vector<64x16xi32> to vector<64x16xf32>
    %cst_9 = arith.constant dense<0.000000e+00> : vector<64x128xf32>
    %13 = tpu.matmul %12, %6, %cst_9 {dimension_numbers = #tpu.dot_dimension_numbers<[1], [0], [0], [1], [0, 0, 1, 1], [], []>} : vector<64x16xf32>, vector<16x128xf32>, vector<64x128xf32> -> vector<64x128xf32>
    %c0_10 = arith.constant 0 : index
    %c0_11 = arith.constant 0 : index
    %14 = vector.load %arg9[%c0_10, %c0_11] : memref<64x128xf32, #tpu.memory_space<vmem>>, vector<64x128xf32>
    tpu.vector_store %arg9[%c0_10, %c0_11], %13 {strides = array<i32>} : memref<64x128xf32, #tpu.memory_space<vmem>>, vector<64x128xf32>,
    %cst_12 = arith.constant 0.000000e+00 : f32
    %15 = vector.broadcast %cst_12 : f32 to vector<8x32xf32>
    %cst_13 = arith.constant 0.000000e+00 : f32
    %16 = vector.broadcast %cst_13 : f32 to vector<8x32xf32>
    %c0_i32 = arith.constant 0 : i32
    %c8_i32 = arith.constant 8 : i32
    %17 = arith.muli %c0_i32, %c8_i32 : i32
    %18 = tpu.assume_multiple %17, 8 : i32
    %19 = arith.index_cast %18 : i32 to index
    %c0_14 = arith.constant 0 : index
    %20 = vector.load %arg9[%19, %c0_14] : memref<64x128xf32, #tpu.memory_space<vmem>>, vector<8x128xf32>
    %cst_15 = arith.constant dense<0.000000e+00> : vector<8x128xf32>
    %21 = tpu.matmul %15, %0, %cst_15 {dimension_numbers = #tpu.dot_dimension_numbers<[1], [0], [0], [1], [0, 0, 1, 1], [], []>} : vector<8x32xf32>, vector<32x128xf32>, vector<8x128xf32> -> vector<8x128xf32>
    %22 = arith.addf %20, %21 : vector<8x128xf32>
    %23 = arith.negf %22 : vector<8x128xf32>
    %24 = math.exp %23 : vector<8x128xf32>
    %cst_16 = arith.constant 1.000000e+00 : f32
    %25 = vector.broadcast %cst_16 : f32 to vector<8x128xf32>
    %26 = arith.addf %25, %24 : vector<8x128xf32>
    %27 = arith.divf %25, %26 : vector<8x128xf32>
    %28 = math.tanh %22 : vector<8x128xf32>
    %29 = vector.extract_strided_slice %27 {offsets = [0, 0], sizes = [8, 32], strides = [1, 1]} : vector<8x128xf32> to vector<8x32xf32>
    %30 = vector.extract_strided_slice %27 {offsets = [0, 32], sizes = [8, 32], strides = [1, 1]} : vector<8x128xf32> to vector<8x32xf32>
    %31 = vector.extract_strided_slice %28 {offsets = [0, 64], sizes = [8, 32], strides = [1, 1]} : vector<8x128xf32> to vector<8x32xf32>
    %32 = vector.extract_strided_slice %27 {offsets = [0, 96], sizes = [8, 32], strides = [1, 1]} : vector<8x128xf32> to vector<8x32xf32>
    %33 = arith.mulf %30, %16 : vector<8x32xf32>
    %34 = arith.mulf %29, %31 : vector<8x32xf32>
    %35 = arith.addf %33, %34 : vector<8x32xf32>
    %36 = math.tanh %35 : vector<8x32xf32>
    %37 = arith.mulf %32, %36 : vector<8x32xf32>
    %38 = arith.index_cast %18 : i32 to index
    %c0_17 = arith.constant 0 : index
    %39 = vector.load %arg10[%38, %c0_17] : memref<64x32xf32, #tpu.memory_space<vmem>>, vector<8x32xf32>
    tpu.vector_store %arg10[%38, %c0_17], %37 {strides = array<i32>} : memref<64x32xf32, #tpu.memory_space<vmem>>, vector<8x32xf32>,
    %c1_i32 = arith.constant 1 : i32
    %c8_i32_18 = arith.constant 8 : i32
    %40 = arith.muli %c1_i32, %c8_i32_18 : i32
    %41 = tpu.assume_multiple %40, 8 : i32
    %42 = arith.index_cast %41 : i32 to index
    %c0_19 = arith.constant 0 : index
    %43 = vector.load %arg9[%42, %c0_19] : memref<64x128xf32, #tpu.memory_space<vmem>>, vector<8x128xf32>
    %cst_20 = arith.constant dense<0.000000e+00> : vector<8x128xf32>
    %44 = tpu.matmul %37, %0, %cst_20 {dimension_numbers = #tpu.dot_dimension_numbers<[1], [0], [0], [1], [0, 0, 1, 1], [], []>} : vector<8x32xf32>, vector<32x128xf32>, vector<8x128xf32> -> vector<8x128xf32>
    %45 = arith.addf %43, %44 : vector<8x128xf32>
    %46 = arith.negf %45 : vector<8x128xf32>
    %47 = math.exp %46 : vector<8x128xf32>
    %cst_21 = arith.constant 1.000000e+00 : f32
    %48 = vector.broadcast %cst_21 : f32 to vector<8x128xf32>
    %49 = arith.addf %48, %47 : vector<8x128xf32>
    %50 = arith.divf %48, %49 : vector<8x128xf32>
    %51 = math.tanh %45 : vector<8x128xf32>
    %52 = vector.extract_strided_slice %50 {offsets = [0, 0], sizes = [8, 32], strides = [1, 1]} : vector<8x128xf32> to vector<8x32xf32>
    %53 = vector.extract_strided_slice %50 {offsets = [0, 32], sizes = [8, 32], strides = [1, 1]} : vector<8x128xf32> to vector<8x32xf32>
    %54 = vector.extract_strided_slice %51 {offsets = [0, 64], sizes = [8, 32], strides = [1, 1]} : vector<8x128xf32> to vector<8x32xf32>
    %55 = vector.extract_strided_slice %50 {offsets = [0, 96], sizes = [8, 32], strides = [1, 1]} : vector<8x128xf32> to vector<8x32xf32>
    %56 = arith.mulf %53, %35 : vector<8x32xf32>
    %57 = arith.mulf %52, %54 : vector<8x32xf32>
    %58 = arith.addf %56, %57 : vector<8x32xf32>
    %59 = math.tanh %58 : vector<8x32xf32>
    %60 = arith.mulf %55, %59 : vector<8x32xf32>
    %61 = arith.index_cast %41 : i32 to index
    %c0_22 = arith.constant 0 : index
    %62 = vector.load %arg10[%61, %c0_22] : memref<64x32xf32, #tpu.memory_space<vmem>>, vector<8x32xf32>
    tpu.vector_store %arg10[%61, %c0_22], %60 {strides = array<i32>} : memref<64x32xf32, #tpu.memory_space<vmem>>, vector<8x32xf32>,
    %c2_i32 = arith.constant 2 : i32
    %c8_i32_23 = arith.constant 8 : i32
    %63 = arith.muli %c2_i32, %c8_i32_23 : i32
    %64 = tpu.assume_multiple %63, 8 : i32
    %65 = arith.index_cast %64 : i32 to index
    %c0_24 = arith.constant 0 : index
    %66 = vector.load %arg9[%65, %c0_24] : memref<64x128xf32, #tpu.memory_space<vmem>>, vector<8x128xf32>
    %cst_25 = arith.constant dense<0.000000e+00> : vector<8x128xf32>
    %67 = tpu.matmul %60, %0, %cst_25 {dimension_numbers = #tpu.dot_dimension_numbers<[1], [0], [0], [1], [0, 0, 1, 1], [], []>} : vector<8x32xf32>, vector<32x128xf32>, vector<8x128xf32> -> vector<8x128xf32>
    %68 = arith.addf %66, %67 : vector<8x128xf32>
    %69 = arith.negf %68 : vector<8x128xf32>
    %70 = math.exp %69 : vector<8x128xf32>
    %cst_26 = arith.constant 1.000000e+00 : f32
    %71 = vector.broadcast %cst_26 : f32 to vector<8x128xf32>
    %72 = arith.addf %71, %70 : vector<8x128xf32>
    %73 = arith.divf %71, %72 : vector<8x128xf32>
    %74 = math.tanh %68 : vector<8x128xf32>
    %75 = vector.extract_strided_slice %73 {offsets = [0, 0], sizes = [8, 32], strides = [1, 1]} : vector<8x128xf32> to vector<8x32xf32>
    %76 = vector.extract_strided_slice %73 {offsets = [0, 32], sizes = [8, 32], strides = [1, 1]} : vector<8x128xf32> to vector<8x32xf32>
    %77 = vector.extract_strided_slice %74 {offsets = [0, 64], sizes = [8, 32], strides = [1, 1]} : vector<8x128xf32> to vector<8x32xf32>
    %78 = vector.extract_strided_slice %73 {offsets = [0, 96], sizes = [8, 32], strides = [1, 1]} : vector<8x128xf32> to vector<8x32xf32>
    %79 = arith.mulf %76, %58 : vector<8x32xf32>
    %80 = arith.mulf %75, %77 : vector<8x32xf32>
    %81 = arith.addf %79, %80 : vector<8x32xf32>
    %82 = math.tanh %81 : vector<8x32xf32>
    %83 = arith.mulf %78, %82 : vector<8x32xf32>
    %84 = arith.index_cast %64 : i32 to index
    %c0_27 = arith.constant 0 : index
    %85 = vector.load %arg10[%84, %c0_27] : memref<64x32xf32, #tpu.memory_space<vmem>>, vector<8x32xf32>
    tpu.vector_store %arg10[%84, %c0_27], %83 {strides = array<i32>} : memref<64x32xf32, #tpu.memory_space<vmem>>, vector<8x32xf32>,
    %c3_i32 = arith.constant 3 : i32
    %c8_i32_28 = arith.constant 8 : i32
    %86 = arith.muli %c3_i32, %c8_i32_28 : i32
    %87 = tpu.assume_multiple %86, 8 : i32
    %88 = arith.index_cast %87 : i32 to index
    %c0_29 = arith.constant 0 : index
    %89 = vector.load %arg9[%88, %c0_29] : memref<64x128xf32, #tpu.memory_space<vmem>>, vector<8x128xf32>
    %cst_30 = arith.constant dense<0.000000e+00> : vector<8x128xf32>
    %90 = tpu.matmul %83, %0, %cst_30 {dimension_numbers = #tpu.dot_dimension_numbers<[1], [0], [0], [1], [0, 0, 1, 1], [], []>} : vector<8x32xf32>, vector<32x128xf32>, vector<8x128xf32> -> vector<8x128xf32>
    %91 = arith.addf %89, %90 : vector<8x128xf32>
    %92 = arith.negf %91 : vector<8x128xf32>
    %93 = math.exp %92 : vector<8x128xf32>
    %cst_31 = arith.constant 1.000000e+00 : f32
    %94 = vector.broadcast %cst_31 : f32 to vector<8x128xf32>
    %95 = arith.addf %94, %93 : vector<8x128xf32>
    %96 = arith.divf %94, %95 : vector<8x128xf32>
    %97 = math.tanh %91 : vector<8x128xf32>
    %98 = vector.extract_strided_slice %96 {offsets = [0, 0], sizes = [8, 32], strides = [1, 1]} : vector<8x128xf32> to vector<8x32xf32>
    %99 = vector.extract_strided_slice %96 {offsets = [0, 32], sizes = [8, 32], strides = [1, 1]} : vector<8x128xf32> to vector<8x32xf32>
    %100 = vector.extract_strided_slice %97 {offsets = [0, 64], sizes = [8, 32], strides = [1, 1]} : vector<8x128xf32> to vector<8x32xf32>
    %101 = vector.extract_strided_slice %96 {offsets = [0, 96], sizes = [8, 32], strides = [1, 1]} : vector<8x128xf32> to vector<8x32xf32>
    %102 = arith.mulf %99, %81 : vector<8x32xf32>
    %103 = arith.mulf %98, %100 : vector<8x32xf32>
    %104 = arith.addf %102, %103 : vector<8x32xf32>
    %105 = math.tanh %104 : vector<8x32xf32>
    %106 = arith.mulf %101, %105 : vector<8x32xf32>
    %107 = arith.index_cast %87 : i32 to index
    %c0_32 = arith.constant 0 : index
    %108 = vector.load %arg10[%107, %c0_32] : memref<64x32xf32, #tpu.memory_space<vmem>>, vector<8x32xf32>
    tpu.vector_store %arg10[%107, %c0_32], %106 {strides = array<i32>} : memref<64x32xf32, #tpu.memory_space<vmem>>, vector<8x32xf32>,
    %c4_i32 = arith.constant 4 : i32
    %c8_i32_33 = arith.constant 8 : i32
    %109 = arith.muli %c4_i32, %c8_i32_33 : i32
    %110 = tpu.assume_multiple %109, 8 : i32
    %111 = arith.index_cast %110 : i32 to index
    %c0_34 = arith.constant 0 : index
    %112 = vector.load %arg9[%111, %c0_34] : memref<64x128xf32, #tpu.memory_space<vmem>>, vector<8x128xf32>
    %cst_35 = arith.constant dense<0.000000e+00> : vector<8x128xf32>
    %113 = tpu.matmul %106, %0, %cst_35 {dimension_numbers = #tpu.dot_dimension_numbers<[1], [0], [0], [1], [0, 0, 1, 1], [], []>} : vector<8x32xf32>, vector<32x128xf32>, vector<8x128xf32> -> vector<8x128xf32>
    %114 = arith.addf %112, %113 : vector<8x128xf32>
    %115 = arith.negf %114 : vector<8x128xf32>
    %116 = math.exp %115 : vector<8x128xf32>
    %cst_36 = arith.constant 1.000000e+00 : f32
    %117 = vector.broadcast %cst_36 : f32 to vector<8x128xf32>
    %118 = arith.addf %117, %116 : vector<8x128xf32>
    %119 = arith.divf %117, %118 : vector<8x128xf32>
    %120 = math.tanh %114 : vector<8x128xf32>
    %121 = vector.extract_strided_slice %119 {offsets = [0, 0], sizes = [8, 32], strides = [1, 1]} : vector<8x128xf32> to vector<8x32xf32>
    %122 = vector.extract_strided_slice %119 {offsets = [0, 32], sizes = [8, 32], strides = [1, 1]} : vector<8x128xf32> to vector<8x32xf32>
    %123 = vector.extract_strided_slice %120 {offsets = [0, 64], sizes = [8, 32], strides = [1, 1]} : vector<8x128xf32> to vector<8x32xf32>
    %124 = vector.extract_strided_slice %119 {offsets = [0, 96], sizes = [8, 32], strides = [1, 1]} : vector<8x128xf32> to vector<8x32xf32>
    %125 = arith.mulf %122, %104 : vector<8x32xf32>
    %126 = arith.mulf %121, %123 : vector<8x32xf32>
    %127 = arith.addf %125, %126 : vector<8x32xf32>
    %128 = math.tanh %127 : vector<8x32xf32>
    %129 = arith.mulf %124, %128 : vector<8x32xf32>
    %130 = arith.index_cast %110 : i32 to index
    %c0_37 = arith.constant 0 : index
    %131 = vector.load %arg10[%130, %c0_37] : memref<64x32xf32, #tpu.memory_space<vmem>>, vector<8x32xf32>
    tpu.vector_store %arg10[%130, %c0_37], %129 {strides = array<i32>} : memref<64x32xf32, #tpu.memory_space<vmem>>, vector<8x32xf32>,
    %c5_i32 = arith.constant 5 : i32
    %c8_i32_38 = arith.constant 8 : i32
    %132 = arith.muli %c5_i32, %c8_i32_38 : i32
    %133 = tpu.assume_multiple %132, 8 : i32
    %134 = arith.index_cast %133 : i32 to index
    %c0_39 = arith.constant 0 : index
    %135 = vector.load %arg9[%134, %c0_39] : memref<64x128xf32, #tpu.memory_space<vmem>>, vector<8x128xf32>
    %cst_40 = arith.constant dense<0.000000e+00> : vector<8x128xf32>
    %136 = tpu.matmul %129, %0, %cst_40 {dimension_numbers = #tpu.dot_dimension_numbers<[1], [0], [0], [1], [0, 0, 1, 1], [], []>} : vector<8x32xf32>, vector<32x128xf32>, vector<8x128xf32> -> vector<8x128xf32>
    %137 = arith.addf %135, %136 : vector<8x128xf32>
    %138 = arith.negf %137 : vector<8x128xf32>
    %139 = math.exp %138 : vector<8x128xf32>
    %cst_41 = arith.constant 1.000000e+00 : f32
    %140 = vector.broadcast %cst_41 : f32 to vector<8x128xf32>
    %141 = arith.addf %140, %139 : vector<8x128xf32>
    %142 = arith.divf %140, %141 : vector<8x128xf32>
    %143 = math.tanh %137 : vector<8x128xf32>
    %144 = vector.extract_strided_slice %142 {offsets = [0, 0], sizes = [8, 32], strides = [1, 1]} : vector<8x128xf32> to vector<8x32xf32>
    %145 = vector.extract_strided_slice %142 {offsets = [0, 32], sizes = [8, 32], strides = [1, 1]} : vector<8x128xf32> to vector<8x32xf32>
    %146 = vector.extract_strided_slice %143 {offsets = [0, 64], sizes = [8, 32], strides = [1, 1]} : vector<8x128xf32> to vector<8x32xf32>
    %147 = vector.extract_strided_slice %142 {offsets = [0, 96], sizes = [8, 32], strides = [1, 1]} : vector<8x128xf32> to vector<8x32xf32>
    %148 = arith.mulf %145, %127 : vector<8x32xf32>
    %149 = arith.mulf %144, %146 : vector<8x32xf32>
    %150 = arith.addf %148, %149 : vector<8x32xf32>
    %151 = math.tanh %150 : vector<8x32xf32>
    %152 = arith.mulf %147, %151 : vector<8x32xf32>
    %153 = arith.index_cast %133 : i32 to index
    %c0_42 = arith.constant 0 : index
    %154 = vector.load %arg10[%153, %c0_42] : memref<64x32xf32, #tpu.memory_space<vmem>>, vector<8x32xf32>
    tpu.vector_store %arg10[%153, %c0_42], %152 {strides = array<i32>} : memref<64x32xf32, #tpu.memory_space<vmem>>, vector<8x32xf32>,
    %c6_i32 = arith.constant 6 : i32
    %c8_i32_43 = arith.constant 8 : i32
    %155 = arith.muli %c6_i32, %c8_i32_43 : i32
    %156 = tpu.assume_multiple %155, 8 : i32
    %157 = arith.index_cast %156 : i32 to index
    %c0_44 = arith.constant 0 : index
    %158 = vector.load %arg9[%157, %c0_44] : memref<64x128xf32, #tpu.memory_space<vmem>>, vector<8x128xf32>
    %cst_45 = arith.constant dense<0.000000e+00> : vector<8x128xf32>
    %159 = tpu.matmul %152, %0, %cst_45 {dimension_numbers = #tpu.dot_dimension_numbers<[1], [0], [0], [1], [0, 0, 1, 1], [], []>} : vector<8x32xf32>, vector<32x128xf32>, vector<8x128xf32> -> vector<8x128xf32>
    %160 = arith.addf %158, %159 : vector<8x128xf32>
    %161 = arith.negf %160 : vector<8x128xf32>
    %162 = math.exp %161 : vector<8x128xf32>
    %cst_46 = arith.constant 1.000000e+00 : f32
    %163 = vector.broadcast %cst_46 : f32 to vector<8x128xf32>
    %164 = arith.addf %163, %162 : vector<8x128xf32>
    %165 = arith.divf %163, %164 : vector<8x128xf32>
    %166 = math.tanh %160 : vector<8x128xf32>
    %167 = vector.extract_strided_slice %165 {offsets = [0, 0], sizes = [8, 32], strides = [1, 1]} : vector<8x128xf32> to vector<8x32xf32>
    %168 = vector.extract_strided_slice %165 {offsets = [0, 32], sizes = [8, 32], strides = [1, 1]} : vector<8x128xf32> to vector<8x32xf32>
    %169 = vector.extract_strided_slice %166 {offsets = [0, 64], sizes = [8, 32], strides = [1, 1]} : vector<8x128xf32> to vector<8x32xf32>
    %170 = vector.extract_strided_slice %165 {offsets = [0, 96], sizes = [8, 32], strides = [1, 1]} : vector<8x128xf32> to vector<8x32xf32>
    %171 = arith.mulf %168, %150 : vector<8x32xf32>
    %172 = arith.mulf %167, %169 : vector<8x32xf32>
    %173 = arith.addf %171, %172 : vector<8x32xf32>
    %174 = math.tanh %173 : vector<8x32xf32>
    %175 = arith.mulf %170, %174 : vector<8x32xf32>
    %176 = arith.index_cast %156 : i32 to index
    %c0_47 = arith.constant 0 : index
    %177 = vector.load %arg10[%176, %c0_47] : memref<64x32xf32, #tpu.memory_space<vmem>>, vector<8x32xf32>
    tpu.vector_store %arg10[%176, %c0_47], %175 {strides = array<i32>} : memref<64x32xf32, #tpu.memory_space<vmem>>, vector<8x32xf32>,
    %c7_i32 = arith.constant 7 : i32
    %c8_i32_48 = arith.constant 8 : i32
    %178 = arith.muli %c7_i32, %c8_i32_48 : i32
    %179 = tpu.assume_multiple %178, 8 : i32
    %180 = arith.index_cast %179 : i32 to index
    %c0_49 = arith.constant 0 : index
    %181 = vector.load %arg9[%180, %c0_49] : memref<64x128xf32, #tpu.memory_space<vmem>>, vector<8x128xf32>
    %cst_50 = arith.constant dense<0.000000e+00> : vector<8x128xf32>
    %182 = tpu.matmul %175, %0, %cst_50 {dimension_numbers = #tpu.dot_dimension_numbers<[1], [0], [0], [1], [0, 0, 1, 1], [], []>} : vector<8x32xf32>, vector<32x128xf32>, vector<8x128xf32> -> vector<8x128xf32>
    %183 = arith.addf %181, %182 : vector<8x128xf32>
    %184 = arith.negf %183 : vector<8x128xf32>
    %185 = math.exp %184 : vector<8x128xf32>
    %cst_51 = arith.constant 1.000000e+00 : f32
    %186 = vector.broadcast %cst_51 : f32 to vector<8x128xf32>
    %187 = arith.addf %186, %185 : vector<8x128xf32>
    %188 = arith.divf %186, %187 : vector<8x128xf32>
    %189 = math.tanh %183 : vector<8x128xf32>
    %190 = vector.extract_strided_slice %188 {offsets = [0, 0], sizes = [8, 32], strides = [1, 1]} : vector<8x128xf32> to vector<8x32xf32>
    %191 = vector.extract_strided_slice %188 {offsets = [0, 32], sizes = [8, 32], strides = [1, 1]} : vector<8x128xf32> to vector<8x32xf32>
    %192 = vector.extract_strided_slice %189 {offsets = [0, 64], sizes = [8, 32], strides = [1, 1]} : vector<8x128xf32> to vector<8x32xf32>
    %193 = vector.extract_strided_slice %188 {offsets = [0, 96], sizes = [8, 32], strides = [1, 1]} : vector<8x128xf32> to vector<8x32xf32>
    %194 = arith.mulf %191, %173 : vector<8x32xf32>
    %195 = arith.mulf %190, %192 : vector<8x32xf32>
    %196 = arith.addf %194, %195 : vector<8x32xf32>
    %197 = math.tanh %196 : vector<8x32xf32>
    %198 = arith.mulf %193, %197 : vector<8x32xf32>
    %199 = arith.index_cast %179 : i32 to index
    %c0_52 = arith.constant 0 : index
    %200 = vector.load %arg10[%199, %c0_52] : memref<64x32xf32, #tpu.memory_space<vmem>>, vector<8x32xf32>
    tpu.vector_store %arg10[%199, %c0_52], %198 {strides = array<i32>} : memref<64x32xf32, #tpu.memory_space<vmem>>, vector<8x32xf32>,
    %c8_i32_53 = arith.constant 8 : i32
    %c0_54 = arith.constant 0 : index
    %c0_55 = arith.constant 0 : index
    %201 = vector.load %arg10[%c0_54, %c0_55] : memref<64x32xf32, #tpu.memory_space<vmem>>, vector<64x32xf32>
    %c0_56 = arith.constant 0 : index
    %c0_57 = arith.constant 0 : index
    %202 = vector.load %arg6[%c0_56, %c0_57] : memref<32x128xf32, #tpu.memory_space<vmem>>, vector<32x128xf32>
    %cst_58 = arith.constant dense<0.000000e+00> : vector<64x128xf32>
    %203 = tpu.matmul %201, %202, %cst_58 {dimension_numbers = #tpu.dot_dimension_numbers<[1], [0], [0], [1], [0, 0, 1, 1], [], []>} : vector<64x32xf32>, vector<32x128xf32>, vector<64x128xf32> -> vector<64x128xf32>
    %c0_59 = arith.constant 0 : index
    %c0_60 = arith.constant 0 : index
    %204 = vector.load %arg7[%c0_59, %c0_60] : memref<1x128xf32, #tpu.memory_space<vmem>>, vector<1x128xf32>
    %205 = vector.broadcast %204 : vector<1x128xf32> to vector<64x128xf32>
    %206 = arith.addf %203, %205 : vector<64x128xf32>
    %cst_61 = arith.constant dense<0xFF800000> : vector<64xf32>
    %207 = vector.multi_reduction <maximumf>, %206, %cst_61 [1] : vector<64x128xf32> to vector<64xf32>
    %208 = vector.shape_cast %207 : vector<64xf32> to vector<64x1xf32>
    %209 = vector.broadcast %208 : vector<64x1xf32> to vector<64x128xf32>
    %210 = arith.subf %206, %209 : vector<64x128xf32>
    %211 = math.exp %210 : vector<64x128xf32>
    %cst_62 = arith.constant dense<0.000000e+00> : vector<64xf32>
    %212 = vector.multi_reduction <add>, %211, %cst_62 [1] : vector<64x128xf32> to vector<64xf32>
    %213 = vector.shape_cast %212 : vector<64xf32> to vector<64x1xf32>
    %214 = math.log %213 : vector<64x1xf32>
    %215 = vector.broadcast %214 : vector<64x1xf32> to vector<64x128xf32>
    %216 = arith.subf %210, %215 : vector<64x128xf32>
    %c0_63 = arith.constant 0 : index
    %c0_64 = arith.constant 0 : index
    %217 = vector.load %arg8[%c0_63, %c0_64] : memref<64x128xf32, #tpu.memory_space<vmem>>, vector<64x128xf32>
    tpu.vector_store %arg8[%c0_63, %c0_64], %216 {strides = array<i32>} : memref<64x128xf32, #tpu.memory_space<vmem>>, vector<64x128xf32>,
    return
  }
  func.func @transform_0(%arg0: i32) -> (i32, i32) {
    %c0_i32 = arith.constant 0 : i32
    %c0_i32_0 = arith.constant 0 : i32
    return %arg0, %c0_i32 : i32, i32
  }
  func.func @transform_1(%arg0: i32) -> (i32, i32) {
    %c0_i32 = arith.constant 0 : i32
    %c0_i32_0 = arith.constant 0 : i32
    %c0_i32_1 = arith.constant 0 : i32
    return %c0_i32, %c0_i32_0 : i32, i32
  }
  func.func @transform_2(%arg0: i32) -> (i32, i32) {
    %c0_i32 = arith.constant 0 : i32
    %c0_i32_0 = arith.constant 0 : i32
    %c0_i32_1 = arith.constant 0 : i32
    return %c0_i32, %c0_i32_0 : i32, i32
  }
  func.func @transform_3(%arg0: i32) -> (i32, i32) {
    %c0_i32 = arith.constant 0 : i32
    %c0_i32_0 = arith.constant 0 : i32
    %c0_i32_1 = arith.constant 0 : i32
    return %c0_i32, %c0_i32_0 : i32, i32
  }
  func.func @transform_4(%arg0: i32) -> (i32, i32) {
    %c0_i32 = arith.constant 0 : i32
    %c0_i32_0 = arith.constant 0 : i32
    %c0_i32_1 = arith.constant 0 : i32
    return %c0_i32, %c0_i32_0 : i32, i32
  }
  func.func @transform_5(%arg0: i32) -> (i32, i32) {
    %c0_i32 = arith.constant 0 : i32
    %c0_i32_0 = arith.constant 0 : i32
    %c0_i32_1 = arith.constant 0 : i32
    return %c0_i32, %c0_i32_0 : i32, i32
  }
  func.func @transform_6(%arg0: i32) -> (i32, i32) {
    %c0_i32 = arith.constant 0 : i32
    %c0_i32_0 = arith.constant 0 : i32
    %c0_i32_1 = arith.constant 0 : i32
    return %c0_i32, %c0_i32_0 : i32, i32
  }
  func.func @transform_7(%arg0: i32) -> (i32, i32) {
    %c0_i32 = arith.constant 0 : i32
    %c0_i32_0 = arith.constant 0 : i32
    return %arg0, %c0_i32 : i32, i32
  }
}

</mosaic_0001>

<bundles_post_ra>
// kernel: lstm_tagger_forward_batched.1
= control target key start
LH: loop header
LB: loop body
LE: loop exit
PB: predicated region body
PF: predicated region fallthrough
CT: control target
= control target key end

     0   :  { %vm43_vm0 = vcmask 261120   ;;  %v1749_v2 = vmov 0   ;;  %v1750_v3 = vmov 0.0   ;;  %vm1751_vm1 = vmmov 0   ;;  %s1753_s24 = smov 32   ;;  %s2108_s2 = inlined_call_operand.vmem [shape: f32[32,128], index: 2, kind: input, shape index: {}]   ;;  %s2109_s1 = inlined_call_operand.vmem [shape: f32[16,32], index: 1, kind: input, shape index: {}]   ;;  %s2110_s0 = inlined_call_operand.vmem [shape: s32[64,1], index: 0, kind: input, shape index: {}]   ;;  %s2111_s4 = inlined_call_operand.vmem [shape: f32[32,128], index: 4, kind: input, shape index: {}]   ;;  %s2112_s3 = inlined_call_operand.vmem [shape: f32[1,128], index: 3, kind: input, shape index: {}]   ;;  %s2113_s5 = inlined_call_operand.vmem [shape: f32[32,128], index: 5, kind: input, shape index: {}]   ;;  %s2114_s6 = inlined_call_operand.vmem [shape: f32[1,128], index: 6, kind: input, shape index: {}]   ;;  %s2115_s7 = inlined_call_operand.vmem [shape: f32[64,128], index: 7, kind: output, shape index: {}]  }
   0x1   :  { %v35_v0 = vld [vmem:[%s2108_s2 + $0x18] sm:$0xff]  ;;  %v34_v1 = vld [vmem:[%s2108_s2 + $0x10] sm:$0xff]  ;;  %1651 = vset.pattern.permute.xlu0 %v1749_v2  ;;  %1538 = vmatprep.subr.mxu0 %v1750_v3  ;;  %v30_v4 = vld [vmem:[%s2109_s1] sm:$0xff]  ;;  %v133_v14 = vlaneseq  ;;  %vm183_vm2 = vcmask 130048  }
   0x2   :  { %1511 = vmatprep.subr.mxu1 %v35_v0  ;;  %1652 = vset.pattern.permute.xlu1 %v1749_v2  ;;  %v33_v5 = vld [vmem:[%s2108_s2 + $0x8] sm:$0xff]  ;;  %v125_v6 = vld [vmem:[%s2110_s0] sm:$0xff]  ;;  %v1824_v10 = vld [vmem:[%s2111_s4 + $0x18] sm:$0xff] }
   0x3   :  { %1512 = vmatpush3.msra.mxu1 %v35_v0  ;;  %1519 = vmatprep.mubr.msk.f32.mxu1 %vm43_vm0, %v30_v4  ;;  %v32_v7 = vld [vmem:[%s2108_s2] sm:$0xff]  ;;  %v126_v8 = vld [vmem:[%s2110_s0 + $0x8] sm:$0xff]  ;;  %v1831_v11 = vld [vmem:[%s2111_s4 + $0x10] sm:$0xff]  ;;  %v1862_v15 = vand.u32 127, %v133_v14 }
   0x4   :  { %1513 = vmatprep.subr.mxu1 %v34_v1  ;;  %136 = vperm.xlu0 %1651, %v125_v6   ;;  %v31_v9 = vld [vmem:[%s2109_s1 + $0x8] sm:$0xff]  ;;  %v1845_v13 = vld [vmem:[%s2111_s4] sm:$0xff]  ;;  %v127_v37 = vld [vmem:[%s2110_s0 + $0x10] sm:$0xff] }
   0x5   :  { %1514 = vmatpush3.msra.mxu1 %v34_v1  ;;  %1539 = vmatpush3.msra.mxu0 %v1824_v10  ;;  %v1838_v12 = vld [vmem:[%s2111_s4 + $0x8] sm:$0xff]  ;;  %v1400_v18 = vld [vmem:[%s2112_s3] ss:$0 sm:$0xff]  ;;  %s1752_s3 = smov 64   ;;  %v131_v39 = vld [vmem:[%s2110_s0 + $0x30] sm:$0xff] }
   0x6   :  { %1515 = vmatprep.subr.mxu1 %v33_v5  ;;  %1540 = vmatprep.subr.mxu0 %v1750_v3  ;;  %v129_v38 = vld [vmem:[%s2110_s0 + $0x20] sm:$0xff]  ;;  %v128_v46 = vld [vmem:[%s2110_s0 + $0x18] sm:$0xff]  ;;  %v130_v47 = vld [vmem:[%s2110_s0 + $0x28] sm:$0xff] }
   0x7   :  { %1516 = vmatpush3.msra.mxu1 %v33_v5  ;;  %1541 = vmatpush3.msra.mxu0 %v1831_v11  ;;  %v132_v48 = vld [vmem:[%s2110_s0 + $0x38] sm:$0xff] }
   0x8   :  { %1517 = vmatprep.subr.mxu1 %v32_v7  ;;  %139 = vperm.xlu0 %1651, %v126_v8  }
   0x9   :  { %1518 = vmatpush3.msra.mxu1 %v32_v7  ;;  %1542 = vmatprep.subr.mxu0 %v1750_v3 }
   0xa   :  { %1520 = vmatmul.mubr.msk.f32.vlgmr.msra.gmra.mxu1 %vm43_vm0, %v31_v9  ;;  %1543 = vmatpush3.msra.mxu0 %v1838_v12 }
   0xb   :  { %1544 = vmatprep.subr.mxu0 %v1750_v3  ;;  %1546 = vmatprep.mubr.msk.f32.mxu0 %vm1751_vm1, %v1750_v3 }
   0xc   :  { %1545 = vmatpush3.msra.mxu0 %v1845_v13 }
   0xd   :  { %1547 = vmatmul.mubr.f32.vlgmr.msra.gmra.mxu0 %v1750_v3  ;;  %1560 = vmatprep.subr.mxu0 %v1750_v3 }
   0xe   :  { %1561 = vmatpush3.msra.mxu0 %v1824_v10  ;;  %1568 = vmatprep.mubr.msk.f32.mxu0 %vm1751_vm1, %v1750_v3 }
   0xf   :  { %1562 = vmatprep.subr.mxu0 %v1750_v3 }
  0x10   :  { %1563 = vmatpush3.msra.mxu0 %v1831_v11 }
  0x11   :  { %1564 = vmatprep.subr.mxu0 %v1750_v3 }
  0x12   :  { %1565 = vmatpush3.msra.mxu0 %v1838_v12 }
  0x13   :  { %1566 = vmatprep.subr.mxu0 %v1750_v3 }
  0x14   :  { %1567 = vmatpush3.msra.mxu0 %v1845_v13 }
  0x15   :  { %1582 = vmatprep.subr.mxu0 %v1750_v3 }
  0x7f   :  { %v137_v16 = vpop.permute.xlu0 %136 }
  0x80   :  { %vm159_vm3 = vcmp.eq.s32.totalorder %v1862_v15, %v137_v16 }
  0x81   :  { %v1403_v17 = vsel %vm159_vm3, 1.0, %v1750_v3 }
  0x82   :  { %1526 = vmatprep.mubr.msk.f32.mxu1 %vm183_vm2, %v1403_v17 }
  0x83   :  { %v140_v20 = vpop.permute.xlu0 %139 }
  0x84   :  { %vm160_vm4 = vcmp.eq.s32.totalorder %v1862_v15, %v140_v20 }
  0x85   :  { %v1404_v24 = vsel %vm160_vm4, 1.0, %v1750_v3 }
  0xca   :  { %v1521_v19 = vpop.f32.mrf.mxu1 }
  0xcb   :  { %v122_v21 = vadd.f32 %v1521_v19, %v1400_v18 }
  0xcc   :  { %v116_v22 = vpop.f32.mrf.mxu1 }
  0xcd   :  { %v117_v23 = vadd.f32 %v1400_v18, %v116_v22  ;;  %1522 = vmatprep.subr.mxu1 %v122_v21  ;;  %v391_v25 = vpop.f32.mrf.mxu0 }
  0xce   :  { %1523 = vmatpush3.msra.mxu1 %v122_v21 }
  0xcf   :  { %1524 = vmatprep.subr.mxu1 %v117_v23  ;;  %v1548_v26 = vpop.f32.mrf.mxu0 }
  0xd0   :  { %1525 = vmatpush3.msra.mxu1 %v117_v23 }
  0xd1   :  { %1527 = vmatmul.mubr.msk.f32.vlgmr.msra.gmra.mxu1 %vm183_vm2, %v1404_v24  ;;  %1549 = vmatprep.subr.mxu1 %v1750_v3 }
  0xd2   :  { %1550 = vmatpush3.msra.mxu1 %v1824_v10 }
  0xd3   :  { %1551 = vmatprep.subr.mxu1 %v1750_v3 }
  0xd4   :  { %1552 = vmatpush3.msra.mxu1 %v1831_v11 }
  0xd5   :  { %1553 = vmatprep.subr.mxu1 %v1750_v3 }
  0xd6   :  { %1554 = vmatpush3.msra.mxu1 %v1838_v12 }
  0xd7   :  { %1555 = vmatprep.subr.mxu1 %v1750_v3 }
  0xd8   :  { %1556 = vmatpush3.msra.mxu1 %v1845_v13 }
  0xd9   :  { %1571 = vmatprep.subr.mxu1 %v1750_v3 }
 0x191   :  { %v1882_v27 = vpop.f32.mrf.mxu1 }
 0x193   :  { %v274_v28 = vpop.f32.mrf.mxu1 }
 0x194   :  { %v395_v29 = vadd.f32 %v391_v25, %v274_v28 }
 0x196   :  { %1653 = vtanh.f32 %v395_v29  ;;  %v1419_v31 = vmul.f32 -1.442695, %v395_v29 }
 0x198   :  { %1655 = vpow2.f32 %v1419_v31 }
 0x1a3   :  { %v1654_v30 = vpop.eup %1653 }
 0x1a4   :  { %405 = vrot.lane.b32.xlu1 %v1654_v30, %s1752_s3 }
 0x1a5   :  { %v1656_v32 = vpop.eup %1655 }
 0x1a6   :  { %v399_v33 = vadd.f32 1.0, %v1656_v32 }
 0x1a8   :  { %1657 = vrcp.f32 %v399_v33 }
 0x1b5   :  { %v1658_v34 = vpop.eup %1657 }
 0x1b6   :  { %v403_v40 = vmul.f32 0.0, %v1658_v34 }
 0x216   :  { %v406_v35 = vpop.permute.xlu1 %405 }
 0x217   :  { %v408_v36 = vmul.f32 %v1658_v34, %v406_v35 }
 0x219   :  { %410 = vrot.lane.b32.xlu1 %v408_v36, %s1753_s24 }
 0x21d   :  { %142 = vperm.xlu1 %1652, %v127_v37  }
 0x221   :  { %148 = vperm.xlu1 %1652, %v129_v38  }
 0x225   :  { %154 = vperm.xlu1 %1652, %v131_v39  }
 0x28b   :  { %v411_v41 = vpop.permute.xlu1 %410 }
 0x28c   :  { %v1895_v42 = vadd.f32 %v411_v41, %v403_v40 }
 0x28e   :  { %1659 = vtanh.f32 %v1895_v42 }
 0x298   :  { %v143_v43 = vpop.permute.xlu1 %142 }
 0x299   :  { %vm161_vm5 = vcmp.eq.s32.totalorder %v1862_v15, %v143_v43 }
 0x29a   :  { %v1405_v44 = vsel %vm161_vm5, 1.0, %v1750_v3 }
 0x29b   :  { %v1660_v45 = vpop.eup %1659  ;;  %1529 = vmatprep.mubr.msk.f32.mxu1 %vm183_vm2, %v1405_v44 }
 0x29c   :  { %416 = vrot.lane.b32.xlu0 %v1660_v45, %s1752_s3  ;;  %v149_v51 = vpop.permute.xlu1 %148 }
 0x29d   :  { %vm163_vm6 = vcmp.eq.s32.totalorder %v1862_v15, %v149_v51 }
 0x29e   :  { %v1407_v54 = vsel %vm163_vm6, 1.0, %v1750_v3 }
 0x2a0   :  { %145 = vperm.xlu0 %1651, %v128_v46   ;;  %v155_v52 = vpop.permute.xlu1 %154 }
 0x2a1   :  { %vm165_vm8 = vcmp.eq.s32.totalorder %v1862_v15, %v155_v52 }
 0x2a2   :  { %v1409_v57 = vsel %vm165_vm8, 1.0, %v1750_v3 }
 0x2a4   :  { %151 = vperm.xlu0 %1651, %v130_v47  }
 0x2a8   :  { %157 = vperm.xlu0 %1651, %v132_v48  }
 0x30e   :  { %v417_v49 = vpop.permute.xlu0 %416 }
 0x30f   :  { %v419_v50 = vmul.f32 %v1658_v34, %v417_v49 }
 0x311   :  { %421 = vrot.lane.b32.xlu1 %v419_v50, %s1753_s24 }
 0x31b   :  { %v146_v53 = vpop.permute.xlu0 %145 }
 0x31c   :  { %vm162_vm7 = vcmp.eq.s32.totalorder %v1862_v15, %v146_v53 }
 0x31d   :  { %v1406_v55 = vsel %vm162_vm7, 1.0, %v1750_v3 }
 0x31e   :  { %1530 = vmatmul.mubr.msk.f32.gmra.mxu1 %vm183_vm2, %v1406_v55 }
 0x31f   :  { %v152_v56 = vpop.permute.xlu0 %151  ;;  %1532 = vmatprep.mubr.msk.f32.mxu1 %vm183_vm2, %v1407_v54 }
 0x320   :  { %vm164_vm9 = vcmp.eq.s32.totalorder %v1862_v15, %v152_v56 }
 0x321   :  { %v1408_v58 = vsel %vm164_vm9, 1.0, %v1750_v3 }
 0x322   :  { %1533 = vmatmul.mubr.msk.f32.gmra.mxu1 %vm183_vm2, %v1408_v58 }
 0x323   :  { %v158_v59 = vpop.permute.xlu0 %157  ;;  %1535 = vmatprep.mubr.msk.f32.mxu1 %vm183_vm2, %v1409_v57 }
 0x324   :  { %vm166_vm10 = vcmp.eq.s32.totalorder %v1862_v15, %v158_v59 }
 0x325   :  { %v1410_v60 = vsel %vm166_vm10, 1.0, %v1750_v3 }
 0x326   :  { %1536 = vmatmul.mubr.msk.f32.gmra.mxu1 %vm183_vm2, %v1410_v60 }
 0x327   :  { %1557 = vmatprep.mubr.msk.f32.mxu1 %vm1751_vm1, %v1750_v3 }
 0x383   :  { %v422_v61 = vpop.permute.xlu1 %421 }
 0x384   :  { %424 = vst.msk [vmem:[#allocation3] sm:$0xff] %vm43_vm0, %v422_v61  ;;  %1558 = vmatmul.mubr.msk.f32.vlgmr.msra.gmra.mxu1 %vm43_vm0, %v422_v61 }
 0x385   :  { %1572 = vmatpush3.msra.mxu1 %v1824_v10  ;;  %1579 = vmatprep.mubr.msk.f32.mxu1 %vm1751_vm1, %v1750_v3 }
 0x386   :  { %1573 = vmatprep.subr.mxu1 %v1750_v3 }
 0x387   :  { %1574 = vmatpush3.msra.mxu1 %v1831_v11 }
 0x388   :  { %1575 = vmatprep.subr.mxu1 %v1750_v3 }
 0x389   :  { %1576 = vmatpush3.msra.mxu1 %v1838_v12 }
 0x38a   :  { %1577 = vmatprep.subr.mxu1 %v1750_v3 }
 0x38b   :  { %1578 = vmatpush3.msra.mxu1 %v1845_v13 }
 0x38c   :  { %1593 = vmatprep.subr.mxu1 %v1750_v3 }
 0x3de   :  { %v1941_v62 = vpop.f32.mrf.mxu1 }
 0x3e0   :  { %v284_v63 = vpop.f32.mrf.mxu1 }
 0x3e2   :  { %v1943_v0 = vpop.f32.mrf.mxu1 }
 0x3e4   :  { %v1945_v1 = vpop.f32.mrf.mxu1 }
 0x3e6   :  { %v1947_v2 = vpop.f32.mrf.mxu1 }
 0x3e8   :  { %v1949_v4 = vpop.f32.mrf.mxu1 }
 0x444   :  { %v495_v5 = vpop.f32.mrf.mxu1 }
 0x445   :  { %v499_v6 = vadd.f32 %v1882_v27, %v495_v5 }
 0x446   :  { %v1559_v7 = vpop.f32.mrf.mxu1 }
 0x447   :  { %1661 = vtanh.f32 %v499_v6  ;;  %v1421_v9 = vmul.f32 -1.442695, %v499_v6 }
 0x449   :  { %1663 = vpow2.f32 %v1421_v9 }
 0x454   :  { %v1662_v8 = vpop.eup %1661 }
 0x455   :  { %509 = vrot.lane.b32.xlu0 %v1662_v8, %s1752_s3 }
 0x456   :  { %v1664_v14 = vpop.eup %1663 }
 0x457   :  { %v503_v15 = vadd.f32 1.0, %v1664_v14 }
 0x459   :  { %1665 = vrcp.f32 %v503_v15 }
 0x466   :  { %v1666_v16 = vpop.eup %1665 }
 0x467   :  { %v507_v19 = vmul.f32 %v1666_v16, %v1895_v42 }
 0x4c7   :  { %v510_v17 = vpop.permute.xlu0 %509 }
 0x4c8   :  { %v512_v18 = vmul.f32 %v1666_v16, %v510_v17 }
 0x4ca   :  { %514 = vrot.lane.b32.xlu1 %v512_v18, %s1753_s24 }
 0x53c   :  { %v515_v20 = vpop.permute.xlu1 %514 }
 0x53d   :  { %v517_v21 = vadd.f32 %v515_v20, %v507_v19 }
 0x53f   :  { %1667 = vtanh.f32 %v517_v21 }
 0x54c   :  { %v1668_v22 = vpop.eup %1667 }
 0x54d   :  { %520 = vrot.lane.b32.xlu0 %v1668_v22, %s1752_s3 }
 0x5bf   :  { %v521_v23 = vpop.permute.xlu0 %520 }
 0x5c0   :  { %v523_v24 = vmul.f32 %v1666_v16, %v521_v23 }
 0x5c2   :  { %525 = vrot.lane.b32.xlu1 %v523_v24, %s1753_s24 }
 0x634   :  { %v526_v25 = vpop.permute.xlu1 %525 }
 0x635   :  { %529 = vst.msk [vmem:[#allocation3 + $0x8] sm:$0xff] %vm43_vm0, %v526_v25  ;;  %1569 = vmatmul.mubr.msk.f32.vlgmr.msra.gmra.mxu0 %vm43_vm0, %v526_v25 }
 0x636   :  { %1583 = vmatpush3.msra.mxu0 %v1824_v10  ;;  %1590 = vmatprep.mubr.msk.f32.mxu0 %vm1751_vm1, %v1750_v3 }
 0x637   :  { %1584 = vmatprep.subr.mxu0 %v1750_v3 }
 0x638   :  { %1585 = vmatpush3.msra.mxu0 %v1831_v11 }
 0x639   :  { %1586 = vmatprep.subr.mxu0 %v1750_v3 }
 0x63a   :  { %1587 = vmatpush3.msra.mxu0 %v1838_v12 }
 0x63b   :  { %1588 = vmatprep.subr.mxu0 %v1750_v3 }
 0x63c   :  { %1589 = vmatpush3.msra.mxu0 %v1845_v13 }
 0x63d   :  { %1604 = vmatprep.subr.mxu0 %v1750_v3 }
 0x6f5   :  { %v600_v26 = vpop.f32.mrf.mxu0 }
 0x6f6   :  { %v604_v27 = vadd.f32 %v600_v26, %v284_v63 }
 0x6f7   :  { %v1570_v28 = vpop.f32.mrf.mxu0 }
 0x6f8   :  { %1669 = vtanh.f32 %v604_v27  ;;  %v1423_v30 = vmul.f32 -1.442695, %v604_v27 }
 0x6fa   :  { %1671 = vpow2.f32 %v1423_v30 }
 0x705   :  { %v1670_v29 = vpop.eup %1669 }
 0x706   :  { %614 = vrot.lane.b32.xlu0 %v1670_v29, %s1752_s3 }
 0x707   :  { %v1672_v31 = vpop.eup %1671 }
 0x708   :  { %v608_v32 = vadd.f32 1.0, %v1672_v31 }
 0x70a   :  { %1673 = vrcp.f32 %v608_v32 }
 0x717   :  { %v1674_v33 = vpop.eup %1673 }
 0x718   :  { %v612_v36 = vmul.f32 %v1674_v33, %v517_v21 }
 0x778   :  { %v615_v34 = vpop.permute.xlu0 %614 }
 0x779   :  { %v617_v35 = vmul.f32 %v1674_v33, %v615_v34  ;;  %v1160_v34 = vld [vmem:[#allocation3] sm:$0xff] }
 0x77b   :  { %619 = vrot.lane.b32.xlu1 %v617_v35, %s1753_s24  ;;  %v1169_v35 = vld [vmem:[%s2113_s5 + $0x8] sm:$0xff] }
 0x7ed   :  { %v620_v37 = vpop.permute.xlu1 %619 }
 0x7ee   :  { %v622_v38 = vadd.f32 %v620_v37, %v612_v36  ;;  %v1168_v36 = vld [vmem:[%s2113_s5] sm:$0xff]  ;;  %v1161_v37 = vld [vmem:[#allocation3 + $0x8] sm:$0xff] }
 0x7f0   :  { %1675 = vtanh.f32 %v622_v38 }
 0x7fd   :  { %v1676_v39 = vpop.eup %1675 }
 0x7fe   :  { %625 = vrot.lane.b32.xlu0 %v1676_v39, %s1752_s3 }
 0x870   :  { %v626_v40 = vpop.permute.xlu0 %625 }
 0x871   :  { %v628_v41 = vmul.f32 %v1674_v33, %v626_v40  ;;  %v1170_v33 = vld [vmem:[%s2113_s5 + $0x10] sm:$0xff] }
 0x873   :  { %630 = vrot.lane.b32.xlu1 %v628_v41, %s1753_s24 }
 0x8e5   :  { %v631_v42 = vpop.permute.xlu1 %630 }
 0x8e6   :  { %634 = vst.msk [vmem:[#allocation3 + $0x10] sm:$0xff] %vm43_vm0, %v631_v42  ;;  %1580 = vmatmul.mubr.msk.f32.vlgmr.msra.gmra.mxu1 %vm43_vm0, %v631_v42 }
 0x8e7   :  { %1594 = vmatpush3.msra.mxu1 %v1824_v10  ;;  %1601 = vmatprep.mubr.msk.f32.mxu1 %vm1751_vm1, %v1750_v3 }
 0x8e8   :  { %1595 = vmatprep.subr.mxu1 %v1750_v3 }
 0x8e9   :  { %1596 = vmatpush3.msra.mxu1 %v1831_v11 }
 0x8ea   :  { %1597 = vmatprep.subr.mxu1 %v1750_v3 }
 0x8eb   :  { %1598 = vmatpush3.msra.mxu1 %v1838_v12 }
 0x8ec   :  { %1599 = vmatprep.subr.mxu1 %v1750_v3 }
 0x8ed   :  { %1600 = vmatpush3.msra.mxu1 %v1845_v13 }
 0x8ee   :  { %1615 = vmatprep.subr.mxu1 %v1750_v3 }
 0x9a6   :  { %v705_v43 = vpop.f32.mrf.mxu1 }
 0x9a7   :  { %v709_v44 = vadd.f32 %v1941_v62, %v705_v43 }
 0x9a8   :  { %v1581_v45 = vpop.f32.mrf.mxu1 }
 0x9a9   :  { %1677 = vtanh.f32 %v709_v44  ;;  %v1425_v47 = vmul.f32 -1.442695, %v709_v44 }
 0x9ab   :  { %1679 = vpow2.f32 %v1425_v47 }
 0x9b6   :  { %v1678_v46 = vpop.eup %1677 }
 0x9b7   :  { %719 = vrot.lane.b32.xlu0 %v1678_v46, %s1752_s3 }
 0x9b8   :  { %v1680_v48 = vpop.eup %1679 }
 0x9b9   :  { %v713_v49 = vadd.f32 1.0, %v1680_v48 }
 0x9bb   :  { %1681 = vrcp.f32 %v713_v49 }
 0x9c8   :  { %v1682_v50 = vpop.eup %1681 }
 0x9c9   :  { %v717_v53 = vmul.f32 %v1682_v50, %v622_v38  ;;  %v1162_v38 = vld [vmem:[#allocation3 + $0x10] sm:$0xff] }
 0xa29   :  { %v720_v51 = vpop.permute.xlu0 %719 }
 0xa2a   :  { %v722_v52 = vmul.f32 %v1682_v50, %v720_v51 }
 0xa2c   :  { %724 = vrot.lane.b32.xlu1 %v722_v52, %s1753_s24 }
 0xa9e   :  { %v725_v54 = vpop.permute.xlu1 %724 }
 0xa9f   :  { %v727_v55 = vadd.f32 %v725_v54, %v717_v53 }
 0xaa1   :  { %1683 = vtanh.f32 %v727_v55 }
 0xaae   :  { %v1684_v56 = vpop.eup %1683 }
 0xaaf   :  { %730 = vrot.lane.b32.xlu0 %v1684_v56, %s1752_s3 }
 0xb21   :  { %v731_v57 = vpop.permute.xlu0 %730 }
 0xb22   :  { %v733_v58 = vmul.f32 %v1682_v50, %v731_v57 }
 0xb24   :  { %735 = vrot.lane.b32.xlu1 %v733_v58, %s1753_s24 }
 0xb96   :  { %v736_v59 = vpop.permute.xlu1 %735 }
 0xb97   :  { %739 = vst.msk [vmem:[#allocation3 + $0x18] sm:$0xff] %vm43_vm0, %v736_v59  ;;  %1591 = vmatmul.mubr.msk.f32.vlgmr.msra.gmra.mxu0 %vm43_vm0, %v736_v59 }
 0xb98   :  { %1605 = vmatpush3.msra.mxu0 %v1824_v10  ;;  %1612 = vmatprep.mubr.msk.f32.mxu0 %vm1751_vm1, %v1750_v3 }
 0xb99   :  { %1606 = vmatprep.subr.mxu0 %v1750_v3 }
 0xb9a   :  { %1607 = vmatpush3.msra.mxu0 %v1831_v11 }
 0xb9b   :  { %1608 = vmatprep.subr.mxu0 %v1750_v3 }
 0xb9c   :  { %1609 = vmatpush3.msra.mxu0 %v1838_v12 }
 0xb9d   :  { %1610 = vmatprep.subr.mxu0 %v1750_v3 }
 0xb9e   :  { %1611 = vmatpush3.msra.mxu0 %v1845_v13  ;;  %v1163_v39 = vld [vmem:[#allocation3 + $0x18] sm:$0xff] }
 0xc57   :  { %v810_v60 = vpop.f32.mrf.mxu0 }
 0xc58   :  { %v814_v61 = vadd.f32 %v810_v60, %v1945_v1 }
 0xc59   :  { %v1592_v62 = vpop.f32.mrf.mxu0 }
 0xc5a   :  { %1685 = vtanh.f32 %v814_v61  ;;  %v1427_v5 = vmul.f32 -1.442695, %v814_v61 }
 0xc5c   :  { %1687 = vpow2.f32 %v1427_v5 }
 0xc67   :  { %v1686_v63 = vpop.eup %1685 }
 0xc68   :  { %824 = vrot.lane.b32.xlu0 %v1686_v63, %s1752_s3 }
 0xc69   :  { %v1688_v6 = vpop.eup %1687 }
 0xc6a   :  { %v818_v7 = vadd.f32 1.0, %v1688_v6 }
 0xc6c   :  { %1689 = vrcp.f32 %v818_v7 }
 0xc79   :  { %v1690_v8 = vpop.eup %1689 }
 0xc7a   :  { %v822_v15 = vmul.f32 %v1690_v8, %v727_v55 }
 0xcda   :  { %v825_v9 = vpop.permute.xlu0 %824 }
 0xcdb   :  { %v827_v14 = vmul.f32 %v1690_v8, %v825_v9 }
 0xcdd   :  { %829 = vrot.lane.b32.xlu1 %v827_v14, %s1753_s24 }
 0xd4f   :  { %v830_v16 = vpop.permute.xlu1 %829 }
 0xd50   :  { %v832_v17 = vadd.f32 %v830_v16, %v822_v15 }
 0xd52   :  { %1691 = vtanh.f32 %v832_v17 }
 0xd5f   :  { %v1692_v1 = vpop.eup %1691 }
 0xd60   :  { %835 = vrot.lane.b32.xlu0 %v1692_v1, %s1752_s3 }
 0xdd2   :  { %v836_v18 = vpop.permute.xlu0 %835 }
 0xdd3   :  { %v838_v19 = vmul.f32 %v1690_v8, %v836_v18 }
 0xdd5   :  { %840 = vrot.lane.b32.xlu1 %v838_v19, %s1753_s24  ;;  %v1434_v19 = vld [vmem:[%s2114_s6] ss:$0 sm:$0xff] }
 0xe47   :  { %v841_v20 = vpop.permute.xlu1 %840 }
 0xe48   :  { %844 = vst.msk [vmem:[#allocation3 + $0x20] sm:$0xff] %vm43_vm0, %v841_v20  ;;  %1602 = vmatmul.mubr.msk.f32.vlgmr.msra.gmra.mxu1 %vm43_vm0, %v841_v20 }
 0xe49   :  { %1616 = vmatpush3.msra.mxu1 %v1824_v10  ;;  %1623 = vmatprep.mubr.msk.f32.mxu1 %vm1751_vm1, %v1750_v3 }
 0xe4a   :  { %1617 = vmatprep.subr.mxu1 %v1750_v3 }
 0xe4b   :  { %1618 = vmatpush3.msra.mxu1 %v1831_v11 }
 0xe4c   :  { %1619 = vmatprep.subr.mxu1 %v1750_v3 }
 0xe4d   :  { %1620 = vmatpush3.msra.mxu1 %v1838_v12 }
 0xe4e   :  { %1621 = vmatprep.subr.mxu1 %v1750_v3 }
 0xe4f   :  { %1622 = vmatpush3.msra.mxu1 %v1845_v13  ;;  %v1164_v40 = vld [vmem:[#allocation3 + $0x20] sm:$0xff] }
 0xf08   :  { %v915_v21 = vpop.f32.mrf.mxu1 }
 0xf09   :  { %v919_v22 = vadd.f32 %v1943_v0, %v915_v21  ;;  %v1171_v0 = vld [vmem:[%s2113_s5 + $0x18] sm:$0xff] }
 0xf0a   :  { %v1603_v23 = vpop.f32.mrf.mxu1  ;;  %1626 = vmatprep.subr.mxu0 %v1171_v0 }
 0xf0b   :  { %1693 = vtanh.f32 %v919_v22  ;;  %v1429_v24 = vmul.f32 -1.442695, %v919_v22 }
 0xf0d   :  { %1695 = vpow2.f32 %v1429_v24 }
 0xf18   :  { %v1694_v10 = vpop.eup %1693 }
 0xf19   :  { %929 = vrot.lane.b32.xlu0 %v1694_v10, %s1752_s3 }
 0xf1a   :  { %v1696_v25 = vpop.eup %1695 }
 0xf1b   :  { %v923_v11 = vadd.f32 1.0, %v1696_v25 }
 0xf1d   :  { %1697 = vrcp.f32 %v923_v11 }
 0xf2a   :  { %v1698_v26 = vpop.eup %1697 }
 0xf2b   :  { %v927_v3 = vmul.f32 %v1698_v26, %v832_v17 }
 0xf8b   :  { %v930_v27 = vpop.permute.xlu0 %929 }
 0xf8c   :  { %v932_v12 = vmul.f32 %v1698_v26, %v930_v27 }
 0xf8e   :  { %934 = vrot.lane.b32.xlu1 %v932_v12, %s1753_s24 }
0x1000   :  { %v935_v13 = vpop.permute.xlu1 %934 }
0x1001   :  { %v937_v28 = vadd.f32 %v935_v13, %v927_v3 }
0x1003   :  { %1699 = vtanh.f32 %v937_v28 }
0x1010   :  { %v1700_v29 = vpop.eup %1699 }
0x1011   :  { %940 = vrot.lane.b32.xlu0 %v1700_v29, %s1752_s3 }
0x1083   :  { %v941_v30 = vpop.permute.xlu0 %940 }
0x1084   :  { %v943_v31 = vmul.f32 %v1698_v26, %v941_v30 }
0x1086   :  { %945 = vrot.lane.b32.xlu1 %v943_v31, %s1753_s24 }
0x10f8   :  { %v946_v32 = vpop.permute.xlu1 %945 }
0x10f9   :  { %949 = vst.msk [vmem:[#allocation3 + $0x28] sm:$0xff] %vm43_vm0, %v946_v32  ;;  %1613 = vmatmul.mubr.msk.f32.vlgmr.msra.gmra.mxu0 %vm43_vm0, %v946_v32 }
0x10fa   :  { %1627 = vmatpush3.msra.mxu0 %v1171_v0  ;;  %1634 = vmatprep.mubr.msk.f32.mxu0 %vm43_vm0, %v1160_v34 }
0x10fb   :  { %1628 = vmatprep.subr.mxu0 %v1170_v33 }
0x10fc   :  { %1629 = vmatpush3.msra.mxu0 %v1170_v33 }
0x10fd   :  { %1630 = vmatprep.subr.mxu0 %v1169_v35 }
0x10fe   :  { %1631 = vmatpush3.msra.mxu0 %v1169_v35 }
0x10ff   :  { %1632 = vmatprep.subr.mxu0 %v1168_v36 }
0x1100   :  { %1633 = vmatpush3.msra.mxu0 %v1168_v36  ;;  %v1165_v41 = vld [vmem:[#allocation3 + $0x28] sm:$0xff] }
0x1101   :  { %1635 = vmatmul.mubr.msk.f32.vlgmr.msra.gmra.mxu0 %vm43_vm0, %v1161_v37 }
0x1102   :  { %1637 = vmatprep.mubr.msk.f32.mxu0 %vm43_vm0, %v1162_v38 }
0x1105   :  { %1638 = vmatmul.mubr.msk.f32.gmra.mxu0 %vm43_vm0, %v1163_v39 }
0x1106   :  { %1640 = vmatprep.mubr.msk.f32.mxu0 %vm43_vm0, %v1164_v40 }
0x1109   :  { %1641 = vmatmul.mubr.msk.f32.gmra.mxu0 %vm43_vm0, %v1165_v41 }
0x11b9   :  { %v1020_v42 = vpop.f32.mrf.mxu0 }
0x11ba   :  { %v1024_v43 = vadd.f32 %v1020_v42, %v1949_v4 }
0x11bb   :  { %v1614_v44 = vpop.f32.mrf.mxu0 }
0x11bc   :  { %1701 = vtanh.f32 %v1024_v43  ;;  %v1431_v46 = vmul.f32 -1.442695, %v1024_v43 }
0x11be   :  { %1703 = vpow2.f32 %v1431_v46 }
0x11c1   :  { %v1636_v17 = vpop.f32.mrf.mxu0 }
0x11c2   :  { %v1275_v26 = vadd.f32 %v1636_v17, %v1434_v19 }
0x11c3   :  { %v1269_v1 = vpop.f32.mrf.mxu0 }
0x11c4   :  { %v1270_v20 = vadd.f32 %v1434_v19, %v1269_v1 }
0x11c5   :  { %v1639_v18 = vpop.f32.mrf.mxu0 }
0x11c6   :  { %v1285_v23 = vadd.f32 %v1639_v18, %v1434_v19 }
0x11c7   :  { %v1279_v21 = vpop.f32.mrf.mxu0 }
0x11c8   :  { %v1280_v22 = vadd.f32 %v1434_v19, %v1279_v21 }
0x11c9   :  { %v1702_v45 = vpop.eup %1701  ;;  %v1642_v10 = vpop.f32.mrf.mxu0 }
0x11ca   :  { %1034 = vrot.lane.b32.xlu0 %v1702_v45, %s1752_s3  ;;  %v1295_v24 = vadd.f32 %v1642_v10, %v1434_v19 }
0x11cb   :  { %v1704_v47 = vpop.eup %1703  ;;  %v1289_v27 = vpop.f32.mrf.mxu0 }
0x11cc   :  { %v1028_v48 = vadd.f32 1.0, %v1704_v47  ;;  %v1290_v12 = vadd.f32 %v1434_v19, %v1289_v27 }
0x11ce   :  { %1705 = vrcp.f32 %v1028_v48 }
0x11db   :  { %v1706_v49 = vpop.eup %1705 }
0x11dc   :  { %v1032_v52 = vmul.f32 %v1706_v49, %v937_v28 }
0x123c   :  { %v1035_v50 = vpop.permute.xlu0 %1034 }
0x123d   :  { %v1037_v51 = vmul.f32 %v1706_v49, %v1035_v50 }
0x123f   :  { %1039 = vrot.lane.b32.xlu1 %v1037_v51, %s1753_s24 }
0x12b1   :  { %v1040_v53 = vpop.permute.xlu1 %1039 }
0x12b2   :  { %v1042_v54 = vadd.f32 %v1040_v53, %v1032_v52 }
0x12b4   :  { %1707 = vtanh.f32 %v1042_v54 }
0x12c1   :  { %v1708_v4 = vpop.eup %1707 }
0x12c2   :  { %1045 = vrot.lane.b32.xlu0 %v1708_v4, %s1752_s3 }
0x1334   :  { %v1046_v55 = vpop.permute.xlu0 %1045 }
0x1335   :  { %v1048_v56 = vmul.f32 %v1706_v49, %v1046_v55 }
0x1337   :  { %1050 = vrot.lane.b32.xlu1 %v1048_v56, %s1753_s24 }
0x13a9   :  { %v1051_v57 = vpop.permute.xlu1 %1050 }
0x13aa   :  { %1054 = vst.msk [vmem:[#allocation3 + $0x30] sm:$0xff] %vm43_vm0, %v1051_v57  ;;  %1624 = vmatmul.mubr.msk.f32.vlgmr.msra.gmra.mxu1 %vm43_vm0, %v1051_v57 }
0x13b1   :  { %v1166_v58 = vld [vmem:[#allocation3 + $0x30] sm:$0xff] }
0x13b2   :  { %1643 = vmatprep.mubr.msk.f32.mxu0 %vm43_vm0, %v1166_v58 }
0x146a   :  { %v1125_v59 = vpop.f32.mrf.mxu1 }
0x146b   :  { %v1129_v60 = vadd.f32 %v1947_v2, %v1125_v59 }
0x146c   :  { %v1625_v61 = vpop.f32.mrf.mxu1 }
0x146d   :  { %1709 = vtanh.f32 %v1129_v60  ;;  %v1433_v63 = vmul.f32 -1.442695, %v1129_v60 }
0x146f   :  { %1711 = vpow2.f32 %v1433_v63 }
0x147a   :  { %v1710_v62 = vpop.eup %1709 }
0x147b   :  { %1139 = vrot.lane.b32.xlu0 %v1710_v62, %s1752_s3 }
0x147c   :  { %v1712_v5 = vpop.eup %1711 }
0x147d   :  { %v1133_v6 = vadd.f32 1.0, %v1712_v5 }
0x147f   :  { %1713 = vrcp.f32 %v1133_v6 }
0x148c   :  { %v1714_v7 = vpop.eup %1713 }
0x148d   :  { %v1137_v14 = vmul.f32 %v1714_v7, %v1042_v54 }
0x14ed   :  { %v1140_v8 = vpop.permute.xlu0 %1139 }
0x14ee   :  { %v1142_v9 = vmul.f32 %v1714_v7, %v1140_v8 }
0x14f0   :  { %1144 = vrot.lane.b32.xlu1 %v1142_v9, %s1753_s24 }
0x1562   :  { %v1145_v15 = vpop.permute.xlu1 %1144 }
0x1563   :  { %v1147_v16 = vadd.f32 %v1145_v15, %v1137_v14 }
0x1565   :  { %1715 = vtanh.f32 %v1147_v16 }
0x1572   :  { %v1716_v2 = vpop.eup %1715 }
0x1573   :  { %1150 = vrot.lane.b32.xlu0 %v1716_v2, %s1752_s3 }
0x1592   :  { %1308 = vmax.xlane.f32.xlu0 %v1270_v20 }
0x1596   :  { %1312 = vmax.xlane.f32.xlu0 %v1280_v22 }
0x159a   :  { %1314 = vmax.xlane.f32.xlu0 %v1285_v23 }
0x159e   :  { %1318 = vmax.xlane.f32.xlu0 %v1295_v24 }
0x15e5   :  { %v1151_v25 = vpop.permute.xlu0 %1150 }
0x15e6   :  { %v1153_v11 = vmul.f32 %v1714_v7, %v1151_v25 }
0x15e8   :  { %1155 = vrot.lane.b32.xlu1 %v1153_v11, %s1753_s24 }
0x160c   :  { %1310 = vmax.xlane.f32.xlu1 %v1275_v26 }
0x1610   :  { %1316 = vmax.xlane.f32.xlu1 %v1290_v12 }
0x161b   :  { %v1309_v28 = vpop.xlane.xlu0 %1308 }
0x161c   :  { %v2062_v32 = vsub.f32 %v1270_v20, %v1309_v28 }
0x161e   :  { %v1332_v36 = vmul.f32 1.442695, %v2062_v32 }
0x161f   :  { %v1313_v0 = vpop.xlane.xlu0 %1312 }
0x1620   :  { %v2068_v37 = vsub.f32 %v1280_v22, %v1313_v0 }
0x1622   :  { %v1336_v41 = vmul.f32 1.442695, %v2068_v37 }
0x1623   :  { %v1315_v30 = vpop.xlane.xlu0 %1314 }
0x1624   :  { %v2064_v33 = vsub.f32 %v1285_v23, %v1315_v30 }
0x1626   :  { %v1338_v39 = vmul.f32 1.442695, %v2064_v33 }
0x1627   :  { %v1319_v35 = vpop.xlane.xlu0 %1318 }
0x1628   :  { %v2071_v40 = vsub.f32 %v1295_v24, %v1319_v35 }
0x162a   :  { %v1342_v43 = vmul.f32 1.442695, %v2071_v40 }
0x165a   :  { %v1156_v3 = vpop.permute.xlu1 %1155 }
0x165b   :  { %1159 = vst.msk [vmem:[#allocation3 + $0x38] sm:$0xff] %vm43_vm0, %v1156_v3 }
0x1662   :  { %v1167_v13 = vld [vmem:[#allocation3 + $0x38] sm:$0xff] }
0x1663   :  { %1644 = vmatmul.mubr.msk.f32.gmra.mxu0 %vm43_vm0, %v1167_v13 }
0x1695   :  { %v1311_v29 = vpop.xlane.xlu1 %1310 }
0x1696   :  { %v2060_v31 = vsub.f32 %v1275_v26, %v1311_v29 }
0x1698   :  { %v1334_v34 = vmul.f32 1.442695, %v2060_v31 }
0x1699   :  { %v1317_v38 = vpop.xlane.xlu1 %1316 }
0x169a   :  { %1717 = vpow2.f32 %v1334_v34  ;;  %v2074_v42 = vsub.f32 %v1290_v12, %v1317_v38 }
0x169b   :  { %1719 = vpow2.f32 %v1332_v36 }
0x169c   :  { %1721 = vpow2.f32 %v1338_v39  ;;  %v1340_v44 = vmul.f32 1.442695, %v2074_v42 }
0x169d   :  { %1723 = vpow2.f32 %v1336_v41 }
0x169e   :  { %1725 = vpow2.f32 %v1342_v43 }
0x169f   :  { %1727 = vpow2.f32 %v1340_v44 }
0x16a7   :  { %v1718_v49 = vpop.eup %1717 }
0x16a8   :  { %v1720_v50 = vpop.eup %1719 }
0x16a9   :  { %v1722_v51 = vpop.eup %1721 }
0x16aa   :  { %v1724_v52 = vpop.eup %1723 }
0x16ab   :  { %v1726_v53 = vpop.eup %1725 }
0x16ac   :  { %v1728_v54 = vpop.eup %1727 }
0x1723   :  { %v1645_v45 = vpop.f32.mrf.mxu0 }
0x1724   :  { %v1305_v46 = vadd.f32 %v1645_v45, %v1434_v19 }
0x1725   :  { %v1299_v47 = vpop.f32.mrf.mxu0 }
0x1726   :  { %v1300_v48 = vadd.f32 %v1434_v19, %v1299_v47  ;;  %1322 = vmax.xlane.f32.xlu0 %v1305_v46 }
0x1728   :  { %1320 = vmax.xlane.f32.xlu1 %v1300_v48 }
0x172a   :  { %1350 = vadd.xlane.f32.xlu0 %v1718_v49 }
0x172c   :  { %1348 = vadd.xlane.f32.xlu1 %v1720_v50 }
0x172e   :  { %1354 = vadd.xlane.f32.xlu0 %v1722_v51 }
0x1730   :  { %1352 = vadd.xlane.f32.xlu1 %v1724_v52 }
0x1732   :  { %1358 = vadd.xlane.f32.xlu0 %v1726_v53 }
0x1734   :  { %1356 = vadd.xlane.f32.xlu1 %v1728_v54 }
0x17af   :  { %v1323_v4 = vpop.xlane.xlu0 %1322 }
0x17b0   :  { %v1331_v55 = vsub.f32 %v1305_v46, %v1323_v4 }
0x17b1   :  { %v1321_v56 = vpop.xlane.xlu1 %1320 }
0x17b2   :  { %v1346_v57 = vmul.f32 1.442695, %v1331_v55  ;;  %v1330_v58 = vsub.f32 %v1300_v48, %v1321_v56 }
0x17b3   :  { %v1351_v59 = vpop.xlane.xlu0 %1350 }
0x17b4   :  { %1729 = vpow2.f32 %v1346_v57  ;;  %v1344_v60 = vmul.f32 1.442695, %v1330_v58 }
0x17b5   :  { %1731 = vlog2.f32 %v1351_v59  ;;  %v1349_v61 = vpop.xlane.xlu1 %1348 }
0x17b6   :  { %1733 = vpow2.f32 %v1344_v60 }
0x17b7   :  { %1735 = vlog2.f32 %v1349_v61  ;;  %v1355_v62 = vpop.xlane.xlu0 %1354 }
0x17b8   :  { %1737 = vlog2.f32 %v1355_v62 }
0x17b9   :  { %v1353_v63 = vpop.xlane.xlu1 %1352 }
0x17ba   :  { %1739 = vlog2.f32 %v1353_v63 }
0x17bb   :  { %v1359_v5 = vpop.xlane.xlu0 %1358 }
0x17bc   :  { %1741 = vlog2.f32 %v1359_v5 }
0x17bd   :  { %v1357_v6 = vpop.xlane.xlu1 %1356 }
0x17be   :  { %1743 = vlog2.f32 %v1357_v6 }
0x17c1   :  { %v1730_v7 = vpop.eup %1729 }
0x17c2   :  { %v1732_v8 = vpop.eup %1731  ;;  %1362 = vadd.xlane.f32.xlu0 %v1730_v7 }
0x17c3   :  { %v1734_v9 = vpop.eup %1733  ;;  %v1367_v14 = vmul.f32 0.6931472, %v1732_v8 }
0x17c4   :  { %v1736_v15 = vpop.eup %1735  ;;  %1360 = vadd.xlane.f32.xlu1 %v1734_v9 }
0x17c5   :  { %v1738_v16 = vpop.eup %1737  ;;  %v1381_v2 = vsub.f32 %v2060_v31, %v1367_v14  ;;  %v1365_v17 = vmul.f32 0.6931472, %v1736_v15 }
0x17c6   :  { %v1371_v1 = vmul.f32 0.6931472, %v1738_v16 }
0x17c7   :  { %v1740_v18 = vpop.eup %1739  ;;  %1389 = vst [vmem:[%s2115_s7 + $0x8] sm:$0xff] %v1381_v2  ;;  %v1380_v19 = vsub.f32 %v2062_v32, %v1365_v17 }
0x17c8   :  { %v1383_v20 = vsub.f32 %v2064_v33, %v1371_v1  ;;  %v1369_v21 = vmul.f32 0.6931472, %v1740_v18 }
0x17c9   :  { %v1742_v22 = vpop.eup %1741  ;;  %1388 = vst [vmem:[%s2115_s7] sm:$0xff] %v1380_v19 }
0x17ca   :  { %1391 = vst [vmem:[%s2115_s7 + $0x18] sm:$0xff] %v1383_v20  ;;  %v1382_v23 = vsub.f32 %v2068_v37, %v1369_v21  ;;  %v1375_v10 = vmul.f32 0.6931472, %v1742_v22 }
0x17cb   :  { %v1744_v24 = vpop.eup %1743 }
0x17cc   :  { %1390 = vst [vmem:[%s2115_s7 + $0x10] sm:$0xff] %v1382_v23  ;;  %v1385_v25 = vsub.f32 %v2071_v40, %v1375_v10  ;;  %v1373_v11 = vmul.f32 0.6931472, %v1744_v24 }
0x17ce   :  { %1393 = vst [vmem:[%s2115_s7 + $0x28] sm:$0xff] %v1385_v25  ;;  %v1384_v26 = vsub.f32 %v2074_v42, %v1373_v11 }
0x17d0   :  { %1392 = vst [vmem:[%s2115_s7 + $0x20] sm:$0xff] %v1384_v26 }
0x184b   :  { %v1363_v27 = vpop.xlane.xlu0 %1362 }
0x184c   :  { %1745 = vlog2.f32 %v1363_v27 }
0x184d   :  { %v1361_v12 = vpop.xlane.xlu1 %1360 }
0x184e   :  { %1747 = vlog2.f32 %v1361_v12 }
0x1859   :  { %v1746_v3 = vpop.eup %1745 }
0x185a   :  { %v1379_v13 = vmul.f32 0.6931472, %v1746_v3 }
0x185b   :  { %v1748_v28 = vpop.eup %1747 }
0x185c   :  { %v1387_v0 = vsub.f32 %v1331_v55, %v1379_v13  ;;  %v1377_v29 = vmul.f32 0.6931472, %v1748_v28 }
0x185e   :  { %1395 = vst [vmem:[%s2115_s7 + $0x38] sm:$0xff] %v1387_v0  ;;  %v1386_v30 = vsub.f32 %v1330_v58, %v1377_v29 }
0x1860   :  { %1394 = vst [vmem:[%s2115_s7 + $0x30] sm:$0xff] %v1386_v30 }

</bundles_post_ra>
